<compile_context>
chip_gen: v6e
topology: v6e:2x2x1
jax: 0.10.0
libtpu: 0.0.40
codegen_flags: <defaults>
</compile_context>

<pallas_src>
import functools

import jax
import jax.numpy as jnp
from jax.experimental import pallas as pl
from jax.experimental.pallas import tpu as pltpu

LANE = 128          # all channel dims are zero-padded to one full lane width
_ROW_BUDGET = 4096  # target rows per grid step (keeps live f32 slabs well under 64 MiB)


# ------------------------------ fused Pallas kernel ------------------------------ #

def _tcn_fused_kernel(*refs, kernel_size, dilations, has_downsample, seq_len):
    """refs = [x, per-block params, lin_w, lin_b, out, pad_scratch].

    Per-block params are (w1, b1, w2, b2[, wd, bd]); wd/bd only when the block has a
    1x1 downsample conv (n_inputs != n_outputs).

    x:      (R, cin)   R = B_TILE*T rows (whole sequences), raw input channels
    w1/w2:  (k*128, 128) bf16, conv taps stacked along the contraction axis
    wd:     (128, 128)  bf16, 1x1 residual conv
    b*:     (1, 128)    f32
    lin_w:  (128, 128)  bf16, lin_b: (1, 128) f32, out: (R, 128) f32
    """
    x_ref = refs[0]
    idx = 1
    blocks = []
    for hd in has_downsample:
        if hd:
            blocks.append(tuple(refs[idx:idx + 6]))
            idx += 6
        else:
            blocks.append(tuple(refs[idx:idx + 4]) + (None, None))
            idx += 4
    lw_ref, lb_ref = refs[idx], refs[idx + 1]
    o_ref = refs[idx + 2]
    pad_ref = refs[idx + 3]

    R, cin = x_ref.shape

    # ---- lane-pad the input to 128 channels inside the kernel (VMEM scratch) ----
    pad_ref[...] = jnp.zeros_like(pad_ref)
    pad_ref[:, 0:cin] = x_ref[...]
    h = pad_ref[...]                                    # (R, 128) f32, zeros beyond cin

    # ---- hoisted causal-shift masks: one (R, 1) iota, one mask per distinct shift ----
    t_in_seq = jax.lax.broadcasted_iota(jnp.int32, (R, 1), 0) % seq_len
    shifts = sorted({(kernel_size - 1 - j) * d
                     for d in dilations for j in range(kernel_size)} - {0})
    masks = {s: (t_in_seq >= s).astype(jnp.float32) for s in shifts}

    def shift_rows(a, s):
        # shifted[t] = a[t - s]; first s rows of every sequence in the tile -> 0
        # (also kills roll wrap-around and cross-sequence leakage within the tile).
        if s == 0:
            return a
        rolled = pltpu.roll(a, shift=s, axis=0)         # XLU sublane rotate (cheap)
        return rolled * masks[s]                        # broadcast (R,1) mask

    def causal_conv(hf32, w_ref, b_ref, d):
        # y[t] = sum_j h[t - (k-1-j)*d] @ W_j + b  ==  [taps concat] @ [taps stacked]
        taps = [shift_rows(hf32, (kernel_size - 1 - j) * d).astype(jnp.bfloat16)
                for j in range(kernel_size)]
        xcat = taps[0] if kernel_size == 1 else jnp.concatenate(taps, axis=-1)
        return jnp.dot(xcat, w_ref[...], preferred_element_type=jnp.float32) + b_ref[...]

    for i, (w1, b1, w2, b2, wd, bd) in enumerate(blocks):
        d = dilations[i]
        h1 = jnp.tanh(causal_conv(h, w1, b1, d))        # conv1 + chomp + tanh (+dropout=id)
        out = jnp.tanh(causal_conv(h1, w2, b2, d))      # conv2 + chomp + tanh (+dropout=id)
        if wd is None:
            res = h                                     # identity residual: no matmul
        else:
            res = jnp.dot(h.astype(jnp.bfloat16), wd[...],
                          preferred_element_type=jnp.float32) + bd[...]
        h = jnp.tanh(out + res)                         # TemporalBlock output

    y = jnp.dot(h.astype(jnp.bfloat16), lw_ref[...],
                preferred_element_type=jnp.float32) + lb_ref[...]
    o_ref[...] = jnp.tanh(y).astype(o_ref.dtype)


# --------------------------------- JAX wrapper ----------------------------------- #

def _choose_b_tile(B, T):
    """Largest batch tile that divides B, keeps rows %8==0 and fits the row budget."""
    divisors = [d for d in range(1, B + 1) if B % d == 0 and (d * T) % 8 == 0]
    fitting = [d for d in divisors if d * T <= _ROW_BUDGET]
    if fitting:
        return max(fitting)
    if divisors:
        return min(divisors)
    return B  # whole-array fallback: block == full array dims is always legal


@functools.partial(jax.jit, static_argnames=(
    "kernel_size", "dilations", "has_downsample", "output_size", "b_tile"))
def _tcn_forward_jit(x, kparams, *, kernel_size, dilations, has_downsample,
                     output_size, b_tile):
    B, T, cin = x.shape
    R = B * T
    r_tile = b_tile * T
    x_flat = x.reshape(R, cin).astype(jnp.float32)

    def resident(arr):  # fetched once, stays VMEM-resident across the grid
        return pl.BlockSpec(arr.shape, lambda i: (0, 0))

    args = [x_flat]
    in_specs = [pl.BlockSpec((r_tile, cin), lambda i: (i, 0))]
    for blk, hd in zip(kparams["blocks"], has_downsample):
        names = ("w1", "b1", "w2", "b2", "wd", "bd") if hd else ("w1", "b1", "w2", "b2")
        for n in names:
            args.append(blk[n])
            in_specs.append(resident(blk[n]))
    for n in ("lin_w", "lin_b"):
        args.append(kparams[n])
        in_specs.append(resident(kparams[n]))

    kern = functools.partial(
        _tcn_fused_kernel,
        kernel_size=kernel_size,
        dilations=dilations,
        has_downsample=has_downsample,
        seq_len=T,
    )
    out = pl.pallas_call(
        kern,
        grid=(B // b_tile,),
        out_shape=jax.ShapeDtypeStruct((R, LANE), jnp.float32),
        in_specs=in_specs,
        out_specs=pl.BlockSpec((r_tile, LANE), lambda i: (i, 0)),
        scratch_shapes=[pltpu.VMEM((r_tile, LANE), jnp.float32)],
        compiler_params=pltpu.CompilerParams(
            dimension_semantics=("parallel",),
            vmem_limit_bytes=64 * 1024 * 1024),
    )(*args)
    # NOTE: consumers that can take the lane-dense (B, T, 128) slab should skip this slice.
    return out.reshape(B, T, LANE)[:, :, :output_size]


def tcn_forward(x, kparams, *, kernel_size, dilations, has_downsample, output_size):
    """x: (B, T, input_size), channel-last (the PyTorch module's input layout)."""
    B, T, _ = x.shape
    b_tile = _choose_b_tile(B, T)
    return _tcn_forward_jit(x, kparams, kernel_size=kernel_size, dilations=dilations,
                            has_downsample=has_downsample, output_size=output_size,
                            b_tile=b_tile)


# ------------------------------ parameter building -------------------------------- #

def _weightnorm_conv(key, cin, cout, k):
    """Deterministic weight_norm(Conv1d) -> effective (k, cin, cout) weight + bias."""
    kv, kg, kb = jax.random.split(key, 3)
    v = 0.1 * jax.random.normal(kv, (cout, cin, k), jnp.float32)   # PyTorch (Cout, Cin, k)
    g = 1.0 + 0.1 * jax.random.normal(kg, (cout,), jnp.float32)
    norm = jnp.sqrt(jnp.sum(v * v, axis=(1, 2), keepdims=True))
    w_pt = g[:, None, None] * v / norm                             # g * v / ||v||
    w = jnp.transpose(w_pt, (2, 1, 0))                             # -> (k, cin, cout)
    b = 0.1 * jax.random.normal(kb, (cout,), jnp.float32)
    return w, b


def _pad2(a, rows, cols):
    return jnp.pad(a, ((0, rows - a.shape[0]), (0, cols - a.shape[1])))


def make_tcn_params(key, input_size, output_size, num_channels, kernel_size):
    """Returns (logical params for the reference, padded/bf16 kernel params,
    static dilations, static has_downsample flags)."""
    assert max([input_size, output_size] + list(num_channels)) <= LANE
    logical = {"blocks": []}
    kernel_p = {"blocks": []}
    dilations, has_downsample = [], []
    keys = jax.random.split(key, len(num_channels) + 1)
    for i, cout in enumerate(num_channels):
        cin = input_size if i == 0 else num_channels[i - 1]
        k1, k2, k3 = jax.random.split(keys[i], 3)
        w1, b1 = _weightnorm_conv(k1, cin, cout, kernel_size)
        w2, b2 = _weightnorm_conv(k2, cout, cout, kernel_size)
        if cin != cout:
            kd1, kd2 = jax.random.split(k3)
            wd = 0.1 * jax.random.normal(kd1, (cin, cout), jnp.float32)   # 1x1 downsample
            bd = 0.1 * jax.random.normal(kd2, (cout,), jnp.float32)
        else:
            wd, bd = None, None                                           # identity residual
        logical["blocks"].append(dict(w1=w1, b1=b1, w2=w2, b2=b2, wd=wd, bd=bd))

        # ---- kernel (lane-padded, tap-stacked, bf16 matmul operands) parameters ----
        w1_cat = jnp.concatenate([_pad2(w1[j], LANE, LANE) for j in range(kernel_size)], 0)
        w2_cat = jnp.concatenate([_pad2(w2[j], LANE, LANE) for j in range(kernel_size)], 0)
        blk = dict(w1=w1_cat.astype(jnp.bfloat16),
                   b1=_pad2(b1.reshape(1, -1), 1, LANE),
                   w2=w2_cat.astype(jnp.bfloat16),
                   b2=_pad2(b2.reshape(1, -1), 1, LANE))
        if wd is not None:
            blk["wd"] = _pad2(wd, LANE, LANE).astype(jnp.bfloat16)
            blk["bd"] = _pad2(bd.reshape(1, -1), 1, LANE)
        kernel_p["blocks"].append(blk)
        dilations.append(2 ** i)
        has_downsample.append(wd is not None)

    kl1, kl2 = jax.random.split(keys[-1])
    clast = num_channels[-1]
    lim = 1.0 / (clast ** 0.5)
    lw = jax.random.uniform(kl1, (clast, output_size), jnp.float32, -lim, lim)
    lb = jax.random.uniform(kl2, (output_size,), jnp.float32, -lim, lim)
    logical["lin_w"], logical["lin_b"] = lw, lb
    kernel_p["lin_w"] = _pad2(lw, LANE, LANE).astype(jnp.bfloat16)
    kernel_p["lin_b"] = _pad2(lb.reshape(1, -1), 1, LANE)
    return logical, kernel_p, tuple(dilations), tuple(has_downsample)


# ------------------------------- pure-JAX reference -------------------------------- #

def tcn_reference(x, params, kernel_size, dilations):
    """Channel-last pure-JAX f32 reference of the PyTorch TCN forward (eval mode)."""
    hi = jax.lax.Precision.HIGHEST
    h = x
    for blk, d in zip(params["blocks"], dilations):
        p = (kernel_size - 1) * d

        def conv(a, w, b, d=d, p=p):
            T = a.shape[1]
            apad = jnp.pad(a, ((0, 0), (p, 0), (0, 0)))
            acc = b
            for j in range(kernel_size):
                acc = acc + jnp.einsum("btc,cd->btd", apad[:, j * d:j * d + T, :], w[j],
                                       precision=hi)
            return acc

        h1 = jnp.tanh(conv(h, blk["w1"], blk["b1"]))
        out = jnp.tanh(conv(h1, blk["w2"], blk["b2"]))
        if blk["wd"] is None:
            res = h
        else:
            res = jnp.einsum("btc,cd->btd", h, blk["wd"], precision=hi) + blk["bd"]
        h = jnp.tanh(out + res)
    y = jnp.einsum("btc,cd->btd", h, params["lin_w"], precision=hi) + params["lin_b"]
    return jnp.tanh(y)


# ------------------------------------- main ---------------------------------------- #

if __name__ == "__main__":
    B, T = 2, 16
    input_size, output_size = 8, 4
    num_channels = [16, 16]
    kernel_size = 2

    key = jax.random.PRNGKey(0)
    kx, kp = jax.random.split(key)
    x = jax.random.normal(kx, (B, T, input_size), jnp.float32)

    logical, kparams, dilations, has_downsample = make_tcn_params(
        kp, input_size, output_size, num_channels, kernel_size)

    out = tcn_forward(x, kparams, kernel_size=kernel_size, dilations=dilations,
                      has_downsample=has_downsample, output_size=output_size)
    jax.block_until_ready(out)

    assert out.shape == (B, T, output_size)
    assert bool(jnp.all(jnp.isfinite(out)))

    ref = tcn_reference(x, logical, kernel_size, dilations)
    err = float(jnp.max(jnp.abs(out - ref)))
    # bf16 matmul operands (f32 accumulation) vs pure-f32 reference -> 2e-2 tolerance.
    assert err < 2e-2, f"Pallas output mismatch vs reference (max abs err {err})"
    print("KERNEL_OK")
</pallas_src>

<mosaic_0001>
module attributes {stable_mosaic.version = 11 : i64} {
  func.func @_tcn_fused_kernel(%arg0: i32, %arg1: memref<32x8xf32, #tpu.memory_space<vmem>>, %arg2: memref<256x128xbf16, #tpu.memory_space<vmem>>, %arg3: memref<1x128xf32, #tpu.memory_space<vmem>>, %arg4: memref<256x128xbf16, #tpu.memory_space<vmem>>, %arg5: memref<1x128xf32, #tpu.memory_space<vmem>>, %arg6: memref<128x128xbf16, #tpu.memory_space<vmem>>, %arg7: memref<1x128xf32, #tpu.memory_space<vmem>>, %arg8: memref<256x128xbf16, #tpu.memory_space<vmem>>, %arg9: memref<1x128xf32, #tpu.memory_space<vmem>>, %arg10: memref<256x128xbf16, #tpu.memory_space<vmem>>, %arg11: memref<1x128xf32, #tpu.memory_space<vmem>>, %arg12: memref<128x128xbf16, #tpu.memory_space<vmem>>, %arg13: memref<1x128xf32, #tpu.memory_space<vmem>>, %arg14: memref<32x128xf32, #tpu.memory_space<vmem>>, %arg15: memref<32x128xf32, #tpu.memory_space<vmem>>) attributes {dimension_semantics = [#tpu.dimension_semantics<parallel>], iteration_bounds = array<i64: 1>, scalar_prefetch = 0 : i64, scratch_operands = 1 : i64, tpu.core_type = #tpu.core_type<tc>, window_params = [{transform_indices = @transform_0, window_bounds = array<i64: 32, 8>}, {pipeline_mode = #tpu.pipeline_mode<synchronous>, transform_indices = @transform_1, window_bounds = array<i64: 256, 128>}, {pipeline_mode = #tpu.pipeline_mode<synchronous>, transform_indices = @transform_2, window_bounds = array<i64: 1, 128>}, {pipeline_mode = #tpu.pipeline_mode<synchronous>, transform_indices = @transform_3, window_bounds = array<i64: 256, 128>}, {pipeline_mode = #tpu.pipeline_mode<synchronous>, transform_indices = @transform_4, window_bounds = array<i64: 1, 128>}, {pipeline_mode = #tpu.pipeline_mode<synchronous>, transform_indices = @transform_5, window_bounds = array<i64: 128, 128>}, {pipeline_mode = #tpu.pipeline_mode<synchronous>, transform_indices = @transform_6, window_bounds = array<i64: 1, 128>}, {pipeline_mode = #tpu.pipeline_mode<synchronous>, transform_indices = @transform_7, window_bounds = array<i64: 256, 128>}, {pipeline_mode = #tpu.pipeline_mode<synchronous>, transform_indices = @transform_8, window_bounds = array<i64: 1, 128>}, {pipeline_mode = #tpu.pipeline_mode<synchronous>, transform_indices = @transform_9, window_bounds = array<i64: 256, 128>}, {pipeline_mode = #tpu.pipeline_mode<synchronous>, transform_indices = @transform_10, window_bounds = array<i64: 1, 128>}, {pipeline_mode = #tpu.pipeline_mode<synchronous>, transform_indices = @transform_11, window_bounds = array<i64: 128, 128>}, {pipeline_mode = #tpu.pipeline_mode<synchronous>, transform_indices = @transform_12, window_bounds = array<i64: 1, 128>}, {transform_indices = @transform_13, window_bounds = array<i64: 32, 128>}]} {
    %cst = arith.constant 0.000000e+00 : f32
    %0 = vector.broadcast %cst : f32 to vector<32x128xf32>
    %c0 = arith.constant 0 : index
    %c0_0 = arith.constant 0 : index
    %1 = vector.load %arg15[%c0, %c0_0] : memref<32x128xf32, #tpu.memory_space<vmem>>, vector<32x128xf32>
    tpu.vector_store %arg15[%c0, %c0_0], %0 {strides = array<i32>} : memref<32x128xf32, #tpu.memory_space<vmem>>, vector<32x128xf32>,
    %c0_1 = arith.constant 0 : index
    %c0_2 = arith.constant 0 : index
    %2 = vector.load %arg1[%c0_1, %c0_2] : memref<32x8xf32, #tpu.memory_space<vmem>>, vector<32x8xf32>
    %c0_3 = arith.constant 0 : index
    %c0_4 = arith.constant 0 : index
    %3 = vector.load %arg15[%c0_3, %c0_4] : memref<32x128xf32, #tpu.memory_space<vmem>>, vector<32x8xf32>
    tpu.vector_store %arg15[%c0_3, %c0_4], %2 {strides = array<i32>} : memref<32x128xf32, #tpu.memory_space<vmem>>, vector<32x8xf32>,
    %c0_5 = arith.constant 0 : index
    %c0_6 = arith.constant 0 : index
    %4 = vector.load %arg15[%c0_5, %c0_6] : memref<32x128xf32, #tpu.memory_space<vmem>>, vector<32x128xf32>
    %5 = tpu.iota {dimensions = array<i32: 0>} : vector<32x1xi32>
    %c16_i32 = arith.constant 16 : i32
    %c0_i32 = arith.constant 0 : i32
    %6 = arith.cmpi eq, %c16_i32, %c0_i32 : i32
    %c1_i32 = arith.constant 1 : i32
    %7 = arith.select %6, %c1_i32, %c16_i32 : i32
    %8 = vector.broadcast %7 : i32 to vector<32x1xi32>
    %9 = arith.remsi %5, %8 : vector<32x1xi32>
    %c0_i32_7 = arith.constant 0 : i32
    %10 = vector.broadcast %c0_i32_7 : i32 to vector<32x1xi32>
    %11 = arith.cmpi ne, %9, %10 : vector<32x1xi32>
    %c0_i32_8 = arith.constant 0 : i32
    %12 = vector.broadcast %c0_i32_8 : i32 to vector<32x1xi32>
    %13 = arith.cmpi slt, %9, %12 : vector<32x1xi32>
    %c0_i32_9 = arith.constant 0 : i32
    %14 = arith.cmpi slt, %7, %c0_i32_9 : i32
    %15 = vector.broadcast %14 : i1 to vector<32x1xi1>
    %16 = vector.broadcast %15 : vector<32x1xi1> to vector<32x1xi1>
    %17 = arith.xori %13, %16 : vector<32x1xi1>
    %18 = arith.andi %17, %11 : vector<32x1xi1>
    %19 = vector.broadcast %7 : i32 to vector<32x1xi32>
    %20 = arith.addi %9, %19 : vector<32x1xi32>
    %21 = arith.select %18, %20, %9 : vector<32x1xi1>, vector<32x1xi32>
    %c1_i32_10 = arith.constant 1 : i32
    %22 = vector.broadcast %c1_i32_10 : i32 to vector<32x1xi32>
    %23 = arith.cmpi sge, %21, %22 : vector<32x1xi32>
    %24 = arith.extui %23 : vector<32x1xi1> to vector<32x1xi32>
    %25 = arith.sitofp %24 : vector<32x1xi32> to vector<32x1xf32>
    %c2_i32 = arith.constant 2 : i32
    %26 = vector.broadcast %c2_i32 : i32 to vector<32x1xi32>
    %27 = arith.cmpi sge, %21, %26 : vector<32x1xi32>
    %28 = arith.extui %27 : vector<32x1xi1> to vector<32x1xi32>
    %29 = arith.sitofp %28 : vector<32x1xi32> to vector<32x1xf32>
    %c1_i32_11 = arith.constant 1 : i32
    %30 = tpu.dynamic_rotate %4 by %c1_i32_11 dim 0 : vector<32x128xf32>, i32 -> vector<32x128xf32>
    %31 = vector.broadcast %25 : vector<32x1xf32> to vector<32x128xf32>
    %32 = arith.mulf %30, %31 : vector<32x128xf32>
    %33 = arith.truncf %32 : vector<32x128xf32> to vector<32x128xbf16>
    %34 = arith.truncf %4 : vector<32x128xf32> to vector<32x128xbf16>
    %35 = tpu.concatenate %33, %34 in 1 : vector<32x128xbf16>, vector<32x128xbf16> -> vector<32x256xbf16>
    %c0_12 = arith.constant 0 : index
    %c0_13 = arith.constant 0 : index
    %36 = vector.load %arg2[%c0_12, %c0_13] : memref<256x128xbf16, #tpu.memory_space<vmem>>, vector<256x128xbf16>
    %cst_14 = arith.constant dense<0.000000e+00> : vector<32x128xf32>
    %37 = tpu.matmul %35, %36, %cst_14 {dimension_numbers = #tpu.dot_dimension_numbers<[1], [0], [0], [1], [0, 0, 1, 1], [], []>} : vector<32x256xbf16>, vector<256x128xbf16>, vector<32x128xf32> -> vector<32x128xf32>
    %c0_15 = arith.constant 0 : index
    %c0_16 = arith.constant 0 : index
    %38 = vector.load %arg3[%c0_15, %c0_16] : memref<1x128xf32, #tpu.memory_space<vmem>>, vector<1x128xf32>
    %39 = vector.broadcast %38 : vector<1x128xf32> to vector<32x128xf32>
    %40 = arith.addf %37, %39 : vector<32x128xf32>
    %41 = math.tanh %40 : vector<32x128xf32>
    %c1_i32_17 = arith.constant 1 : i32
    %42 = tpu.dynamic_rotate %41 by %c1_i32_17 dim 0 : vector<32x128xf32>, i32 -> vector<32x128xf32>
    %43 = vector.broadcast %25 : vector<32x1xf32> to vector<32x128xf32>
    %44 = arith.mulf %42, %43 : vector<32x128xf32>
    %45 = arith.truncf %44 : vector<32x128xf32> to vector<32x128xbf16>
    %46 = arith.truncf %41 : vector<32x128xf32> to vector<32x128xbf16>
    %47 = tpu.concatenate %45, %46 in 1 : vector<32x128xbf16>, vector<32x128xbf16> -> vector<32x256xbf16>
    %c0_18 = arith.constant 0 : index
    %c0_19 = arith.constant 0 : index
    %48 = vector.load %arg4[%c0_18, %c0_19] : memref<256x128xbf16, #tpu.memory_space<vmem>>, vector<256x128xbf16>
    %cst_20 = arith.constant dense<0.000000e+00> : vector<32x128xf32>
    %49 = tpu.matmul %47, %48, %cst_20 {dimension_numbers = #tpu.dot_dimension_numbers<[1], [0], [0], [1], [0, 0, 1, 1], [], []>} : vector<32x256xbf16>, vector<256x128xbf16>, vector<32x128xf32> -> vector<32x128xf32>
    %c0_21 = arith.constant 0 : index
    %c0_22 = arith.constant 0 : index
    %50 = vector.load %arg5[%c0_21, %c0_22] : memref<1x128xf32, #tpu.memory_space<vmem>>, vector<1x128xf32>
    %51 = vector.broadcast %50 : vector<1x128xf32> to vector<32x128xf32>
    %52 = arith.addf %49, %51 : vector<32x128xf32>
    %53 = math.tanh %52 : vector<32x128xf32>
    %54 = arith.truncf %4 : vector<32x128xf32> to vector<32x128xbf16>
    %c0_23 = arith.constant 0 : index
    %c0_24 = arith.constant 0 : index
    %55 = vector.load %arg6[%c0_23, %c0_24] : memref<128x128xbf16, #tpu.memory_space<vmem>>, vector<128x128xbf16>
    %cst_25 = arith.constant dense<0.000000e+00> : vector<32x128xf32>
    %56 = tpu.matmul %54, %55, %cst_25 {dimension_numbers = #tpu.dot_dimension_numbers<[1], [0], [0], [1], [0, 0, 1, 1], [], []>} : vector<32x128xbf16>, vector<128x128xbf16>, vector<32x128xf32> -> vector<32x128xf32>
    %c0_26 = arith.constant 0 : index
    %c0_27 = arith.constant 0 : index
    %57 = vector.load %arg7[%c0_26, %c0_27] : memref<1x128xf32, #tpu.memory_space<vmem>>, vector<1x128xf32>
    %58 = vector.broadcast %57 : vector<1x128xf32> to vector<32x128xf32>
    %59 = arith.addf %56, %58 : vector<32x128xf32>
    %60 = arith.addf %53, %59 : vector<32x128xf32>
    %61 = math.tanh %60 : vector<32x128xf32>
    %c2_i32_28 = arith.constant 2 : i32
    %62 = tpu.dynamic_rotate %61 by %c2_i32_28 dim 0 : vector<32x128xf32>, i32 -> vector<32x128xf32>
    %63 = vector.broadcast %29 : vector<32x1xf32> to vector<32x128xf32>
    %64 = arith.mulf %62, %63 : vector<32x128xf32>
    %65 = arith.truncf %64 : vector<32x128xf32> to vector<32x128xbf16>
    %66 = arith.truncf %61 : vector<32x128xf32> to vector<32x128xbf16>
    %67 = tpu.concatenate %65, %66 in 1 : vector<32x128xbf16>, vector<32x128xbf16> -> vector<32x256xbf16>
    %c0_29 = arith.constant 0 : index
    %c0_30 = arith.constant 0 : index
    %68 = vector.load %arg8[%c0_29, %c0_30] : memref<256x128xbf16, #tpu.memory_space<vmem>>, vector<256x128xbf16>
    %cst_31 = arith.constant dense<0.000000e+00> : vector<32x128xf32>
    %69 = tpu.matmul %67, %68, %cst_31 {dimension_numbers = #tpu.dot_dimension_numbers<[1], [0], [0], [1], [0, 0, 1, 1], [], []>} : vector<32x256xbf16>, vector<256x128xbf16>, vector<32x128xf32> -> vector<32x128xf32>
    %c0_32 = arith.constant 0 : index
    %c0_33 = arith.constant 0 : index
    %70 = vector.load %arg9[%c0_32, %c0_33] : memref<1x128xf32, #tpu.memory_space<vmem>>, vector<1x128xf32>
    %71 = vector.broadcast %70 : vector<1x128xf32> to vector<32x128xf32>
    %72 = arith.addf %69, %71 : vector<32x128xf32>
    %73 = math.tanh %72 : vector<32x128xf32>
    %c2_i32_34 = arith.constant 2 : i32
    %74 = tpu.dynamic_rotate %73 by %c2_i32_34 dim 0 : vector<32x128xf32>, i32 -> vector<32x128xf32>
    %75 = vector.broadcast %29 : vector<32x1xf32> to vector<32x128xf32>
    %76 = arith.mulf %74, %75 : vector<32x128xf32>
    %77 = arith.truncf %76 : vector<32x128xf32> to vector<32x128xbf16>
    %78 = arith.truncf %73 : vector<32x128xf32> to vector<32x128xbf16>
    %79 = tpu.concatenate %77, %78 in 1 : vector<32x128xbf16>, vector<32x128xbf16> -> vector<32x256xbf16>
    %c0_35 = arith.constant 0 : index
    %c0_36 = arith.constant 0 : index
    %80 = vector.load %arg10[%c0_35, %c0_36] : memref<256x128xbf16, #tpu.memory_space<vmem>>, vector<256x128xbf16>
    %cst_37 = arith.constant dense<0.000000e+00> : vector<32x128xf32>
    %81 = tpu.matmul %79, %80, %cst_37 {dimension_numbers = #tpu.dot_dimension_numbers<[1], [0], [0], [1], [0, 0, 1, 1], [], []>} : vector<32x256xbf16>, vector<256x128xbf16>, vector<32x128xf32> -> vector<32x128xf32>
    %c0_38 = arith.constant 0 : index
    %c0_39 = arith.constant 0 : index
    %82 = vector.load %arg11[%c0_38, %c0_39] : memref<1x128xf32, #tpu.memory_space<vmem>>, vector<1x128xf32>
    %83 = vector.broadcast %82 : vector<1x128xf32> to vector<32x128xf32>
    %84 = arith.addf %81, %83 : vector<32x128xf32>
    %85 = math.tanh %84 : vector<32x128xf32>
    %86 = arith.addf %85, %61 : vector<32x128xf32>
    %87 = math.tanh %86 : vector<32x128xf32>
    %88 = arith.truncf %87 : vector<32x128xf32> to vector<32x128xbf16>
    %c0_40 = arith.constant 0 : index
    %c0_41 = arith.constant 0 : index
    %89 = vector.load %arg12[%c0_40, %c0_41] : memref<128x128xbf16, #tpu.memory_space<vmem>>, vector<128x128xbf16>
    %cst_42 = arith.constant dense<0.000000e+00> : vector<32x128xf32>
    %90 = tpu.matmul %88, %89, %cst_42 {dimension_numbers = #tpu.dot_dimension_numbers<[1], [0], [0], [1], [0, 0, 1, 1], [], []>} : vector<32x128xbf16>, vector<128x128xbf16>, vector<32x128xf32> -> vector<32x128xf32>
    %c0_43 = arith.constant 0 : index
    %c0_44 = arith.constant 0 : index
    %91 = vector.load %arg13[%c0_43, %c0_44] : memref<1x128xf32, #tpu.memory_space<vmem>>, vector<1x128xf32>
    %92 = vector.broadcast %91 : vector<1x128xf32> to vector<32x128xf32>
    %93 = arith.addf %90, %92 : vector<32x128xf32>
    %94 = math.tanh %93 : vector<32x128xf32>
    %c0_45 = arith.constant 0 : index
    %c0_46 = arith.constant 0 : index
    %95 = vector.load %arg14[%c0_45, %c0_46] : memref<32x128xf32, #tpu.memory_space<vmem>>, vector<32x128xf32>
    tpu.vector_store %arg14[%c0_45, %c0_46], %94 {strides = array<i32>} : memref<32x128xf32, #tpu.memory_space<vmem>>, vector<32x128xf32>,
    return
  }
  func.func @transform_0(%arg0: i32) -> (i32, i32) {
    %c0_i32 = arith.constant 0 : i32
    %c0_i32_0 = arith.constant 0 : i32
    return %arg0, %c0_i32 : i32, i32
  }
  func.func @transform_1(%arg0: i32) -> (i32, i32) {
    %c0_i32 = arith.constant 0 : i32
    %c0_i32_0 = arith.constant 0 : i32
    %c0_i32_1 = arith.constant 0 : i32
    return %c0_i32, %c0_i32_0 : i32, i32
  }
  func.func @transform_2(%arg0: i32) -> (i32, i32) {
    %c0_i32 = arith.constant 0 : i32
    %c0_i32_0 = arith.constant 0 : i32
    %c0_i32_1 = arith.constant 0 : i32
    return %c0_i32, %c0_i32_0 : i32, i32
  }
  func.func @transform_3(%arg0: i32) -> (i32, i32) {
    %c0_i32 = arith.constant 0 : i32
    %c0_i32_0 = arith.constant 0 : i32
    %c0_i32_1 = arith.constant 0 : i32
    return %c0_i32, %c0_i32_0 : i32, i32
  }
  func.func @transform_4(%arg0: i32) -> (i32, i32) {
    %c0_i32 = arith.constant 0 : i32
    %c0_i32_0 = arith.constant 0 : i32
    %c0_i32_1 = arith.constant 0 : i32
    return %c0_i32, %c0_i32_0 : i32, i32
  }
  func.func @transform_5(%arg0: i32) -> (i32, i32) {
    %c0_i32 = arith.constant 0 : i32
    %c0_i32_0 = arith.constant 0 : i32
    %c0_i32_1 = arith.constant 0 : i32
    return %c0_i32, %c0_i32_0 : i32, i32
  }
  func.func @transform_6(%arg0: i32) -> (i32, i32) {
    %c0_i32 = arith.constant 0 : i32
    %c0_i32_0 = arith.constant 0 : i32
    %c0_i32_1 = arith.constant 0 : i32
    return %c0_i32, %c0_i32_0 : i32, i32
  }
  func.func @transform_7(%arg0: i32) -> (i32, i32) {
    %c0_i32 = arith.constant 0 : i32
    %c0_i32_0 = arith.constant 0 : i32
    %c0_i32_1 = arith.constant 0 : i32
    return %c0_i32, %c0_i32_0 : i32, i32
  }
  func.func @transform_8(%arg0: i32) -> (i32, i32) {
    %c0_i32 = arith.constant 0 : i32
    %c0_i32_0 = arith.constant 0 : i32
    %c0_i32_1 = arith.constant 0 : i32
    return %c0_i32, %c0_i32_0 : i32, i32
  }
  func.func @transform_9(%arg0: i32) -> (i32, i32) {
    %c0_i32 = arith.constant 0 : i32
    %c0_i32_0 = arith.constant 0 : i32
    %c0_i32_1 = arith.constant 0 : i32
    return %c0_i32, %c0_i32_0 : i32, i32
  }
  func.func @transform_10(%arg0: i32) -> (i32, i32) {
    %c0_i32 = arith.constant 0 : i32
    %c0_i32_0 = arith.constant 0 : i32
    %c0_i32_1 = arith.constant 0 : i32
    return %c0_i32, %c0_i32_0 : i32, i32
  }
  func.func @transform_11(%arg0: i32) -> (i32, i32) {
    %c0_i32 = arith.constant 0 : i32
    %c0_i32_0 = arith.constant 0 : i32
    %c0_i32_1 = arith.constant 0 : i32
    return %c0_i32, %c0_i32_0 : i32, i32
  }
  func.func @transform_12(%arg0: i32) -> (i32, i32) {
    %c0_i32 = arith.constant 0 : i32
    %c0_i32_0 = arith.constant 0 : i32
    %c0_i32_1 = arith.constant 0 : i32
    return %c0_i32, %c0_i32_0 : i32, i32
  }
  func.func @transform_13(%arg0: i32) -> (i32, i32) {
    %c0_i32 = arith.constant 0 : i32
    %c0_i32_0 = arith.constant 0 : i32
    return %arg0, %c0_i32 : i32, i32
  }
}

</mosaic_0001>

<bundles_post_ra>
// kernel: _tcn_forward_jit.1
= control target key start
LH: loop header
LB: loop body
LE: loop exit
PB: predicated region body
PF: predicated region fallthrough
CT: control target
= control target key end

     0   :  { %18 = vsyncpa [#allocation4], 0  ;;  %s2087_s0 = inlined_call_operand.vmem [shape: f32[32,8], index: 0, kind: input, shape index: {}]   ;;  %s2088_s1 = inlined_call_operand.hbm [shape: bf16[256,128], index: 1, kind: input, shape index: {}]   ;;  %s2089_s2 = inlined_call_operand.vmem [shape: f32[1,128], index: 2, kind: input, shape index: {}]   ;;  %s2090_s3 = inlined_call_operand.hbm [shape: bf16[256,128], index: 3, kind: input, shape index: {}]   ;;  %s2091_s4 = inlined_call_operand.vmem [shape: f32[1,128], index: 4, kind: input, shape index: {}]   ;;  %s2092_s5 = inlined_call_operand.hbm [shape: bf16[128,128], index: 5, kind: input, shape index: {}]   ;;  %s2093_s6 = inlined_call_operand.vmem [shape: f32[1,128], index: 6, kind: input, shape index: {}]   ;;  %s2094_s7 = inlined_call_operand.hbm [shape: bf16[256,128], index: 7, kind: input, shape index: {}]   ;;  %s2095_s8 = inlined_call_operand.vmem [shape: f32[1,128], index: 8, kind: input, shape index: {}]   ;;  %s2096_s9 = inlined_call_operand.hbm [shape: bf16[256,128], index: 9, kind: input, shape index: {}]   ;;  %s2097_s10 = inlined_call_operand.vmem [shape: f32[1,128], index: 10, kind: input, shape index: {}]   ;;  %s2098_s11 = inlined_call_operand.vmem [shape: bf16[128,128], index: 11, kind: input, shape index: {}]   ;;  %s2099_s12 = inlined_call_operand.vmem [shape: f32[1,128], index: 12, kind: input, shape index: {}]   ;;  %s2100_s13 = inlined_call_operand.vmem [shape: f32[32,128], index: 13, kind: output, shape index: {}]  }
   0x1   :  { %19 = vsyncpa [#allocation6], 0 }
   0x2   :  { %20 = vsyncpa [#allocation9], 0  ;;  %s1810_s25 = smov [#allocation5]   ;;  %s1811_s27 = smov [#allocation8]  }
   0x3   :  { %s42_s26 = sshll.u32 %s1810_s25, 4  ;;  %s70_s28 = sshll.u32 %s1811_s27, 4  ;;  %s43_s26 = int_to_ptr.vmem [resolvable:$true] %s42_s26  ;;  %s71_s28 = int_to_ptr.vmem [resolvable:$true] %s70_s28 }
   0x4   :  { %s1712_s29 = scalar_lea.vmem %s43_s26, 2048  ;;  %p1717_p1 = scmp.lt.s32.totalorder %s43_s26, %s43_s26 }
   0x5   :  { %p1713_p0 = scmp.ne.s32.totalorder %s43_s26, %s1712_s29  ;;  %p1718_p2 = scmp.lt.s32.totalorder %s1712_s29, %s1712_s29 }
   0x7   :  { %p1719_p3 = por %p1718_p2, %p1717_p1 }
   0x9   :  { %p1720_p4 = pnand %p1719_p3, %p1713_p0 }
   0xb   :  { %1723 = shalt.err (!%p1720_p4)
}
   0xc   :  { %s1812_s30 = smov 64   ;;  %s1813_s14 = smov 4  }
   0xd   :  { %48 = dma.hbm_to_vmem [thread:$0]  %s2090_s3, 2048, %s43_s26, [#allocation6], %s1812_s30, %s1812_s30, %s1813_s14  }
   0xe   :  { %s1732_s17 = scalar_lea.vmem %s71_s28, 2048  ;;  %p1737_p6 = scmp.lt.s32.totalorder %s71_s28, %s71_s28 }
   0xf   :  { %p1733_p5 = scmp.ne.s32.totalorder %s71_s28, %s1732_s17  ;;  %p1738_p7 = scmp.lt.s32.totalorder %s1732_s17, %s1732_s17 }
  0x11   :  { %p1739_p8 = por %p1738_p7, %p1737_p6 }
  0x13   :  { %p1740_p9 = pnand %p1739_p8, %p1733_p5 }
  0x15   :  { %1743 = shalt.err (!%p1740_p9)
}
  0x16   :  { %76 = dma.hbm_to_vmem [thread:$0]  %s2094_s7, 2048, %s71_s28, [#allocation9], %s1812_s30, %s1812_s30, %s1813_s14  }
  0x17   :  { %s1814_s20 = smov [#allocation3]   ;;  %s1815_s22 = smov [#allocation7]  }
  0x18   :  { %s28_s21 = sshll.u32 %s1814_s20, 4  ;;  %s56_s23 = sshll.u32 %s1815_s22, 4  ;;  %s29_s21 = int_to_ptr.vmem [resolvable:$true] %s28_s21  ;;  %s57_s23 = int_to_ptr.vmem [resolvable:$true] %s56_s23 }
  0x19   :  { %s1752_s3 = scalar_lea.vmem %s29_s21, 2048  ;;  %p1757_p11 = scmp.lt.s32.totalorder %s29_s21, %s29_s21 }
  0x1a   :  { %p1753_p10 = scmp.ne.s32.totalorder %s29_s21, %s1752_s3  ;;  %p1758_p12 = scmp.lt.s32.totalorder %s1752_s3, %s1752_s3 }
  0x1c   :  { %p1759_p13 = por %p1758_p12, %p1757_p11 }
  0x1e   :  { %p1760_p0 = pnand %p1759_p13, %p1753_p10 }
  0x20   :  { %1763 = shalt.err (!%p1760_p0)
}
  0x21   :  { %34 = dma.hbm_to_vmem [thread:$0]  %s2088_s1, 2048, %s29_s21, [#allocation4], %s1812_s30, %s1812_s30, %s1813_s14  }
  0x22   :  { %s1772_s7 = scalar_lea.vmem %s57_s23, 1024  ;;  %p1777_p2 = scmp.lt.s32.totalorder %s57_s23, %s57_s23 }
  0x23   :  { %p1773_p1 = scmp.ne.s32.totalorder %s57_s23, %s1772_s7  ;;  %p1778_p3 = scmp.lt.s32.totalorder %s1772_s7, %s1772_s7 }
  0x25   :  { %p1779_p4 = por %p1778_p3, %p1777_p2 }
  0x27   :  { %p1780_p5 = pnand %p1779_p4, %p1773_p1 }
  0x29   :  { %1783 = shalt.err (!%p1780_p5)
}
  0x2a   :  { %62 = dma.hbm_to_vmem [thread:$0]  %s2092_s5, 1024, %s57_s23, [#allocation6], %s1812_s30, %s1812_s30, %s1813_s14  }
  0x2b   :  { %s1816_s28 = smov [#allocation10]  }
  0x2c   :  { %s84_s29 = sshll.u32 %s1816_s28, 4  ;;  %s85_s29 = int_to_ptr.vmem [resolvable:$true] %s84_s29 }
  0x2d   :  { %s1792_s15 = scalar_lea.vmem %s85_s29, 2048  ;;  %p1797_p7 = scmp.lt.s32.totalorder %s85_s29, %s85_s29 }
  0x2e   :  { %p1793_p6 = scmp.ne.s32.totalorder %s85_s29, %s1792_s15  ;;  %p1798_p8 = scmp.lt.s32.totalorder %s1792_s15, %s1792_s15 }
  0x30   :  { %p1799_p9 = por %p1798_p8, %p1797_p7 }
  0x32   :  { %p1800_p10 = pnand %p1799_p9, %p1793_p6 }
  0x34   :  { %1803 = shalt.err (!%p1800_p10)
}
  0x35   :  { %90 = dma.hbm_to_vmem [thread:$0]  %s2096_s9, 2048, %s85_s29, [#allocation9], %s1812_s30, %s1812_s30, %s1813_s14  }
  0x36   :  { %1804 = dma.done.wait [#allocation4], 2048  }
  0x37   :  { %1805 = vsyncadd [#allocation4], 4294965248 }
  0x38   :  { %1806 = dma.done.wait [#allocation6], 3072  }
  0x39   :  { %1807 = vsyncadd [#allocation6], 4294964224 }
  0x3a   :  { %1808 = dma.done.wait [#allocation9], 4096  }
  0x3b   :  { %1809 = vsyncadd [#allocation9], 4294963200  ;;  %v1817_v0 = vmov 0.0   ;;  %v1568_v1 = vld [vmem:[#allocation3 + $0x78] sm:$0xff]   ;;  %v1570_v3 = vld [vmem:[#allocation3 + $0x70] sm:$0xff]   ;;  %v130_v5 = vlaneseq  ;;  %vm121_vm0 = vcmask 64512  }
  0x3c   :  { %113 = vst [vmem:[#allocation2] sm:$0xff] %v1817_v0  ;;  %114 = vst [vmem:[#allocation2 + $0x8] sm:$0xff] %v1817_v0  ;;  %v1569_v2 = vld [vmem:[#allocation3 + $0x38] sm:$0xff]   ;;  %1388 = vmatprep.subr.bf16.mxu0 %v1568_v1  ;;  %v1571_v4 = vld [vmem:[#allocation3 + $0x30] sm:$0xff]  }
  0x3d   :  { %116 = vst [vmem:[#allocation2 + $0x18] sm:$0xff] %v1817_v0  ;;  %115 = vst [vmem:[#allocation2 + $0x10] sm:$0xff] %v1817_v0  ;;  %1389 = vmatpush3.bf16.msra.mxu0 %v1569_v2  ;;  %v1572_v6 = vld [vmem:[#allocation3 + $0x68] sm:$0xff]   ;;  %v1922_v8 = vshrl.u32 %v130_v5, 7  ;;  %v1574_v9 = vld [vmem:[#allocation3 + $0x60] sm:$0xff]  }
  0x3e   :  { %1390 = vmatprep.subr.bf16.mxu0 %v1570_v3  ;;  %v1573_v7 = vld [vmem:[#allocation3 + $0x28] sm:$0xff]   ;;  %v1575_v11 = vld [vmem:[#allocation3 + $0x20] sm:$0xff]   ;;  %v1576_v12 = vld [vmem:[#allocation3 + $0x58] sm:$0xff]  }
  0x3f   :  { %v1925_v10 = vadd.s32 16, %v1922_v8  ;;  %v139_v13 = vand.u32 15, %v1922_v8  ;;  %v1577_v15 = vld [vmem:[#allocation3 + $0x18] sm:$0xff]   ;;  %v1578_v16 = vld [vmem:[#allocation3 + $0x50] sm:$0xff]   ;;  %v117_v17 = vld [vmem:[%s2087_s0] sm:$0xff]  ;;  %vm211_vm3 = vcmp.lt.s32.totalorder %v1922_v8, 1 }
  0x40   :  { %v118_v18 = vld [vmem:[%s2087_s0 + $0x8] sm:$0xff]  ;;  %v120_v19 = vld [vmem:[%s2087_s0 + $0x18] sm:$0xff]  ;;  %v1579_v21 = vld [vmem:[#allocation3 + $0x10] sm:$0xff]   ;;  %122 = vst.msk [vmem:[#allocation2] sm:$0xff] %vm121_vm0, %v117_v17  ;;  %vm748_vm5 = vcmp.lt.s32.totalorder %v1922_v8, 2 }
  0x41   :  { %1391 = vmatpush3.bf16.msra.mxu0 %v1571_v4  ;;  %v153_v14 = vand.u32 15, %v1925_v10  ;;  %vm1940_vm1 = vcmp.ge.s32.totalorder %v139_v13, 1  ;;  %123 = vst.msk [vmem:[#allocation2 + $0x8] sm:$0xff] %vm121_vm0, %v118_v18  ;;  %125 = vst.msk [vmem:[#allocation2 + $0x18] sm:$0xff] %vm121_vm0, %v120_v19  ;;  %v119_v22 = vld [vmem:[%s2087_s0 + $0x10] sm:$0xff]  ;;  %v1580_v23 = vld [vmem:[#allocation3 + $0x48] sm:$0xff]  }
  0x42   :  { %1392 = vmatprep.subr.bf16.mxu0 %v1572_v6  ;;  %124 = vst.msk [vmem:[#allocation2 + $0x10] sm:$0xff] %vm121_vm0, %v119_v22  ;;  %v1581_v24 = vld [vmem:[#allocation3 + $0x8] sm:$0xff]   ;;  %v1582_v25 = vld [vmem:[#allocation3 + $0x40] sm:$0xff]   ;;  %v1952_v29 = vsel %vm1940_vm1, 1.0, %v1817_v0  ;;  %v1584_v47 = vld [vmem:[#allocation5 + $0x78] sm:$0xff]   ;;  %vm195_vm4 = vcmp.ge.s32.totalorder %v139_v13, 2 }
  0x43   :  { %vm185_vm2 = vcmp.ge.s32.totalorder %v153_v14, 1  ;;  %v1583_v36 = vld [vmem:[#allocation3] sm:$0xff]   ;;  %v1585_v48 = vld [vmem:[#allocation5 + $0x38] sm:$0xff]   ;;  %1416 = vmatprep.subr.bf16.mxu1 %v1584_v47  ;;  %v1586_v49 = vld [vmem:[#allocation5 + $0x70] sm:$0xff]   ;;  %vm197_vm6 = vcmp.ge.s32.totalorder %v153_v14, 2 }
  0x44   :  { %v1956_v30 = vsel %vm185_vm2, 1.0, %v1817_v0  ;;  %1417 = vmatpush3.bf16.msra.mxu1 %v1585_v48  ;;  %v1587_v50 = vld [vmem:[#allocation5 + $0x30] sm:$0xff]   ;;  %v1588_v51 = vld [vmem:[#allocation5 + $0x68] sm:$0xff]   ;;  %v1590_v53 = vld [vmem:[#allocation5 + $0x60] sm:$0xff]  }
  0x45   :  { %1393 = vmatpush3.bf16.msra.mxu0 %v1573_v7  ;;  %1418 = vmatprep.subr.bf16.mxu1 %v1586_v49  ;;  %v1589_v52 = vld [vmem:[#allocation5 + $0x28] sm:$0xff]   ;;  %v1591_v54 = vld [vmem:[#allocation5 + $0x20] sm:$0xff]   ;;  %v1592_v55 = vld [vmem:[#allocation5 + $0x58] sm:$0xff]  }
  0x46   :  { %1394 = vmatprep.subr.bf16.mxu0 %v1574_v9  ;;  %v1593_v56 = vld [vmem:[#allocation7 + $0x38] sm:$0xff]   ;;  %v1595_v58 = vld [vmem:[#allocation5 + $0x50] sm:$0xff]   ;;  %v1598_v61 = vld [vmem:[#allocation5 + $0x48] sm:$0xff]  }
  0x47   :  { %v126_v26 = vld [vmem:[#allocation2] sm:$0xff]  ;;  %v1594_v57 = vld [vmem:[#allocation5 + $0x18] sm:$0xff]   ;;  %v1596_v59 = vld [vmem:[#allocation7 + $0x30] sm:$0xff]  }
  0x48   :  { %v127_v27 = vld [vmem:[#allocation2 + $0x8] sm:$0xff]  ;;  %v129_v28 = vld [vmem:[#allocation2 + $0x18] sm:$0xff]  ;;  %v207_v31 = vrot.slane %v126_v26, 7  ;;  %1419 = vmatpush3.bf16.msra.mxu1 %v1587_v50  ;;  %v1597_v60 = vld [vmem:[#allocation5 + $0x10] sm:$0xff]  }
  0x49   :  { %1395 = vmatpush3.bf16.msra.mxu0 %v1575_v11  ;;  %v208_v32 = vrot.slane %v127_v27, 7  ;;  %v222_v33 = vpack.c.bf16 %v127_v27, %v126_v26  ;;  %v210_v34 = vrot.slane %v129_v28, 7  ;;  %v128_v35 = vld [vmem:[#allocation2 + $0x10] sm:$0xff]  ;;  %1420 = vmatprep.subr.bf16.mxu1 %v1588_v51  ;;  %v1599_v62 = vld [vmem:[#allocation7 + $0x28] sm:$0xff]   ;;  %v1601_v1 = vld [vmem:[#allocation5 + $0x40] sm:$0xff]  }
  0x4a   :  { %1396 = vmatprep.subr.bf16.mxu0 %v1576_v12  ;;  %v209_v37 = vrot.slane %v128_v35, 7  ;;  %v1963_v42 = vpack.c.bf16 %v129_v28, %v128_v35  ;;  %v1600_v63 = vld [vmem:[#allocation5 + $0x8] sm:$0xff]   ;;  %v1602_v2 = vld [vmem:[#allocation7 + $0x20] sm:$0xff]   ;;  %v1604_v4 = vld [vmem:[#allocation7 + $0x18] sm:$0xff]  }
  0x4b   :  { %391 = vmatprep.mubr.bf16.mxu0 %v222_v33  ;;  %v214_v38 = vsel %vm211_vm3, %v207_v31, %v208_v32  ;;  %v215_v39 = vsel %vm211_vm3, %v210_v34, %v207_v31  ;;  %v1603_v3 = vld [vmem:[#allocation5] sm:$0xff]   ;;  %v1605_v5 = vld [vmem:[#allocation7 + $0x10] sm:$0xff]   ;;  %v1606_v6 = vld [vmem:[#allocation7 + $0x8] sm:$0xff]  }
  0x4c   :  { %v216_v40 = vmul.f32 %v1952_v29, %v215_v39  ;;  %v213_v43 = vsel %vm211_vm3, %v208_v32, %v209_v37  ;;  %v212_v45 = vsel %vm211_vm3, %v209_v37, %v210_v34  ;;  %1421 = vmatpush3.bf16.msra.mxu1 %v1589_v52  ;;  %v1607_v7 = vld [vmem:[#allocation7] sm:$0xff]   ;;  %v1608_v49 = vld [vmem:[#allocation8 + $0x78] sm:$0xff]   ;;  %v1610_v50 = vld [vmem:[#allocation8 + $0x70] sm:$0xff]  }
  0x4d   :  { %1397 = vmatpush3.bf16.msra.mxu0 %v1577_v15  ;;  %v218_v44 = vmul.f32 %v1956_v30, %v213_v43  ;;  %1422 = vmatprep.subr.bf16.mxu1 %v1590_v53  ;;  %v1302_v12 = vld [vmem:[%s2089_s2] ss:$0 sm:$0xff]  ;;  %v1611_v51 = vld [vmem:[#allocation8 + $0x30] sm:$0xff]   ;;  %v1612_v52 = vld [vmem:[#allocation8 + $0x68] sm:$0xff]  }
  0x4e   :  { %1398 = vmatprep.subr.bf16.mxu0 %v1578_v16  ;;  %v220_v41 = vpack.c.bf16 %v214_v38, %v216_v40  ;;  %v1613_v53 = vld [vmem:[#allocation8 + $0x28] sm:$0xff]   ;;  %v1624_v10 = vld [vmem:[#allocation10 + $0x78] sm:$0xff]  }
  0x4f   :  { %v221_v46 = vpack.c.bf16 %v212_v45, %v218_v44  ;;  %v1625_v14 = vld [vmem:[#allocation10 + $0x38] sm:$0xff]   ;;  %v1642_v8 = vld [vmem:[%s2098_s11 + $0x28] sm:$0xff]  }
  0x50   :  { %1423 = vmatpush3.bf16.msra.mxu1 %v1591_v54  ;;  %v1614_v54 = vld [vmem:[#allocation8 + $0x60] sm:$0xff]  }
  0x51   :  { %1399 = vmatpush3.bf16.msra.mxu0 %v1579_v21  ;;  %1424 = vmatprep.subr.bf16.mxu1 %v1592_v55  ;;  %v1615_v55 = vld [vmem:[#allocation8 + $0x20] sm:$0xff]  }
  0x52   :  { %1400 = vmatprep.subr.bf16.mxu0 %v1580_v23 }
  0x54   :  { %1425 = vmatpush3.bf16.msra.mxu1 %v1594_v57  ;;  %v1618_v57 = vld [vmem:[#allocation8 + $0x50] sm:$0xff]  }
  0x55   :  { %1401 = vmatpush3.bf16.msra.mxu0 %v1581_v24  ;;  %1426 = vmatprep.subr.bf16.mxu1 %v1595_v58  ;;  %v1619_v58 = vld [vmem:[#allocation8 + $0x10] sm:$0xff]  }
  0x56   :  { %1402 = vmatprep.subr.bf16.mxu0 %v1582_v25 }
  0x58   :  { %1427 = vmatpush3.bf16.msra.mxu1 %v1597_v60  ;;  %v1621_v60 = vld [vmem:[#allocation8 + $0x8] sm:$0xff]  }
  0x59   :  { %1403 = vmatpush3.bf16.msra.mxu0 %v1583_v36  ;;  %1428 = vmatprep.subr.bf16.mxu1 %v1598_v61  ;;  %v1622_v61 = vld [vmem:[#allocation8 + $0x40] sm:$0xff]  }
  0x5a   :  { %1520 = vmatprep.subr.bf16.mxu0 %v1593_v56 }
  0x5c   :  { %392 = vmatmul.mubr.bf16.vlgmr.msra.gmra.mxu0 %v220_v41  ;;  %1429 = vmatpush3.bf16.msra.mxu1 %v1600_v63 }
  0x5d   :  { %399 = vmatprep.mubr.bf16.mxu0 %v1963_v42  ;;  %1521 = vmatpush3.bf16.msra.mxu0 %v1593_v56  ;;  %v1616_v56 = vld [vmem:[#allocation8 + $0x58] sm:$0xff]  }
  0x5e   :  { %1522 = vmatprep.subr.bf16.mxu0 %v1596_v59  ;;  %1430 = vmatprep.subr.bf16.mxu1 %v1601_v1  ;;  %v1319_v1 = vld [vmem:[%s2091_s4] ss:$0 sm:$0xff] }
  0x60   :  { %1431 = vmatpush3.bf16.msra.mxu1 %v1603_v3 }
  0x61   :  { %1523 = vmatpush3.bf16.msra.mxu0 %v1596_v59  ;;  %1454 = vmatprep.subr.bf16.mxu1 %v1608_v49  ;;  %v1620_v59 = vld [vmem:[#allocation8 + $0x48] sm:$0xff]  }
  0x62   :  { %1524 = vmatprep.subr.bf16.mxu0 %v1599_v62 }
  0x64   :  { %400 = vmatmul.mubr.bf16.gmra.mxu0 %v221_v46 }
  0x65   :  { %1536 = vmatprep.mubr.bf16.mxu0 %v222_v33  ;;  %1525 = vmatpush3.bf16.msra.mxu0 %v1599_v62  ;;  %v1623_v62 = vld [vmem:[#allocation8] sm:$0xff]  }
  0x66   :  { %1526 = vmatprep.subr.bf16.mxu0 %v1602_v2 }
  0x69   :  { %1527 = vmatpush3.bf16.msra.mxu0 %v1602_v2 }
  0x6a   :  { %1528 = vmatprep.subr.bf16.mxu0 %v1604_v4 }
  0x6d   :  { %1529 = vmatpush3.bf16.msra.mxu0 %v1604_v4 }
  0x6e   :  { %1530 = vmatprep.subr.bf16.mxu0 %v1605_v5 }
  0x71   :  { %1531 = vmatpush3.bf16.msra.mxu0 %v1605_v5 }
  0x72   :  { %1532 = vmatprep.subr.bf16.mxu0 %v1606_v6 }
  0x75   :  { %1533 = vmatpush3.bf16.msra.mxu0 %v1606_v6 }
  0x76   :  { %1534 = vmatprep.subr.bf16.mxu0 %v1607_v7 }
  0x79   :  { %1535 = vmatpush3.bf16.msra.mxu0 %v1607_v7 }
  0x7a   :  { %1482 = vmatprep.subr.bf16.mxu0 %v1624_v10  ;;  %v1362_v10 = vld [vmem:[%s2097_s10] ss:$0 sm:$0xff] }
  0x7c   :  { %1537 = vmatmul.mubr.bf16.vlgmr.msra.gmra.mxu0 %v1963_v42 }
  0x7d   :  { %1483 = vmatpush3.bf16.msra.mxu0 %v1625_v14 }
 0x11c   :  { %v1404_v9 = vpop.f32.mrf.mxu0 }
 0x11e   :  { %v1405_v11 = vpop.f32.mrf.mxu0 }
 0x11f   :  { %v1406_v15 = vadd.f32 %v1405_v11, %v1404_v9 }
 0x120   :  { %v1407_v16 = vpop.f32.mrf.mxu0 }
 0x121   :  { %v394_v17 = vadd.f32 %v1406_v15, %v1302_v12 }
 0x122   :  { %v1408_v18 = vpop.f32.mrf.mxu0 }
 0x123   :  { %v1409_v19 = vadd.f32 %v1408_v18, %v1407_v16  ;;  %1648 = vtanh.f32 %v394_v17 }
 0x124   :  { %v1410_v20 = vpop.f32.mrf.mxu0 }
 0x125   :  { %v397_v21 = vadd.f32 %v1409_v19, %v1302_v12 }
 0x126   :  { %v1411_v22 = vpop.f32.mrf.mxu0 }
 0x127   :  { %1650 = vtanh.f32 %v397_v21  ;;  %v1412_v24 = vadd.f32 %v1411_v22, %v1410_v20 }
 0x128   :  { %v1413_v23 = vpop.f32.mrf.mxu0 }
 0x129   :  { %v402_v27 = vadd.f32 %v1412_v24, %v1302_v12 }
 0x12a   :  { %v1414_v25 = vpop.f32.mrf.mxu0 }
 0x12b   :  { %v1415_v26 = vadd.f32 %v1414_v25, %v1413_v23  ;;  %v1336_v23 = vld [vmem:[%s2093_s6] ss:$0 sm:$0xff] }
 0x12d   :  { %v405_v28 = vadd.f32 %v1415_v26, %v1302_v12 }
 0x12f   :  { %1652 = vtanh.f32 %v405_v28 }
 0x130   :  { %1654 = vtanh.f32 %v402_v27  ;;  %v1649_v31 = vpop.eup %1648 }
 0x131   :  { %v412_v35 = vrot.slane %v1649_v31, 7 }
 0x134   :  { %v1651_v32 = vpop.eup %1650 }
 0x135   :  { %v426_v33 = vpack.c.bf16 %v1651_v32, %v1649_v31  ;;  %v413_v36 = vrot.slane %v1651_v32, 7 }
 0x137   :  { %595 = vmatprep.mubr.bf16.mxu1 %v426_v33  ;;  %v418_v41 = vsel %vm211_vm3, %v412_v35, %v413_v36 }
 0x13c   :  { %v1653_v34 = vpop.eup %1652  ;;  %v1538_v7 = vpop.f32.mrf.mxu0 }
 0x13d   :  { %v415_v37 = vrot.slane %v1653_v34, 7  ;;  %v1655_v38 = vpop.eup %1654 }
 0x13e   :  { %v414_v42 = vrot.slane %v1655_v38, 7  ;;  %v427_v44 = vpack.c.bf16 %v1653_v34, %v1655_v38  ;;  %v721_v16 = vpop.f32.mrf.mxu0  ;;  %v730_v34 = vadd.f32 %v1538_v7, %v1336_v23 }
 0x13f   :  { %v419_v39 = vsel %vm211_vm3, %v415_v37, %v412_v35  ;;  %v722_v25 = vadd.f32 %v1336_v23, %v721_v16 }
 0x140   :  { %v420_v40 = vmul.f32 %v1952_v29, %v419_v39  ;;  %v417_v45 = vsel %vm211_vm3, %v413_v36, %v414_v42  ;;  %v416_v46 = vsel %vm211_vm3, %v414_v42, %v415_v37  ;;  %v1609_v29 = vld [vmem:[#allocation8 + $0x38] sm:$0xff]   ;;  %v1539_v21 = vpop.f32.mrf.mxu0 }
 0x141   :  { %v422_v47 = vmul.f32 %v1956_v30, %v417_v45  ;;  %v1617_v30 = vld [vmem:[#allocation8 + $0x18] sm:$0xff]   ;;  %v733_v36 = vadd.f32 %v1539_v21, %v1336_v23 }
 0x142   :  { %v424_v43 = vpack.c.bf16 %v418_v41, %v420_v40  ;;  %v724_v26 = vpop.f32.mrf.mxu0 }
 0x143   :  { %v425_v48 = vpack.c.bf16 %v416_v46, %v422_v47  ;;  %v725_v28 = vadd.f32 %v1336_v23, %v724_v26 }
 0x144   :  { %596 = vmatmul.mubr.bf16.vlgmr.msra.gmra.mxu1 %v424_v43 }
 0x145   :  { %603 = vmatprep.mubr.bf16.mxu1 %v427_v44  ;;  %1455 = vmatpush3.bf16.msra.mxu1 %v1609_v29  ;;  %v2002_v44 = vsel %vm195_vm4, 1.0, %v1817_v0 }
 0x146   :  { %1456 = vmatprep.subr.bf16.mxu1 %v1610_v50 }
 0x149   :  { %1457 = vmatpush3.bf16.msra.mxu1 %v1611_v51 }
 0x14a   :  { %1458 = vmatprep.subr.bf16.mxu1 %v1612_v52 }
 0x14c   :  { %604 = vmatmul.mubr.bf16.gmra.mxu1 %v425_v48 }
 0x14d   :  { %1459 = vmatpush3.bf16.msra.mxu1 %v1613_v53  ;;  %v2021_v53 = vsel %vm197_vm6, 1.0, %v1817_v0  ;;  %v1628_v0 = vld [vmem:[#allocation10 + $0x68] sm:$0xff]  }
 0x14e   :  { %1460 = vmatprep.subr.bf16.mxu1 %v1614_v54 }
 0x151   :  { %1461 = vmatpush3.bf16.msra.mxu1 %v1615_v55 }
 0x152   :  { %1462 = vmatprep.subr.bf16.mxu1 %v1616_v56 }
 0x155   :  { %1463 = vmatpush3.bf16.msra.mxu1 %v1617_v30 }
 0x156   :  { %1464 = vmatprep.subr.bf16.mxu1 %v1618_v57  ;;  %v1626_v57 = vld [vmem:[#allocation10 + $0x70] sm:$0xff]  }
 0x157   :  { %1484 = vmatprep.subr.bf16.mxu0 %v1626_v57 }
 0x159   :  { %1465 = vmatpush3.bf16.msra.mxu1 %v1619_v58  ;;  %v1627_v58 = vld [vmem:[#allocation10 + $0x30] sm:$0xff]  }
 0x15a   :  { %1466 = vmatprep.subr.bf16.mxu1 %v1620_v59  ;;  %1485 = vmatpush3.bf16.msra.mxu0 %v1627_v58  ;;  %v1629_v59 = vld [vmem:[#allocation10 + $0x28] sm:$0xff]  }
 0x15b   :  { %1486 = vmatprep.subr.bf16.mxu0 %v1628_v0 }
 0x15d   :  { %1467 = vmatpush3.bf16.msra.mxu1 %v1621_v60  ;;  %v1630_v60 = vld [vmem:[#allocation10 + $0x60] sm:$0xff]  }
 0x15e   :  { %1468 = vmatprep.subr.bf16.mxu1 %v1622_v61  ;;  %1487 = vmatpush3.bf16.msra.mxu0 %v1629_v59  ;;  %v1631_v61 = vld [vmem:[#allocation10 + $0x20] sm:$0xff]  }
 0x15f   :  { %1488 = vmatprep.subr.bf16.mxu0 %v1630_v60 }
 0x161   :  { %1469 = vmatpush3.bf16.msra.mxu1 %v1623_v62  ;;  %v1632_v62 = vld [vmem:[#allocation10 + $0x58] sm:$0xff]  }
 0x162   :  { %1489 = vmatpush3.bf16.msra.mxu0 %v1631_v61 }
 0x163   :  { %1490 = vmatprep.subr.bf16.mxu0 %v1632_v62 }
 0x204   :  { %v1432_v63 = vpop.f32.mrf.mxu1 }
 0x206   :  { %v1433_v2 = vpop.f32.mrf.mxu1 }
 0x207   :  { %v1434_v3 = vadd.f32 %v1433_v2, %v1432_v63  ;;  %v1633_v63 = vld [vmem:[#allocation10 + $0x18] sm:$0xff]   ;;  %v1635_v2 = vld [vmem:[#allocation10 + $0x10] sm:$0xff]  }
 0x208   :  { %v1435_v4 = vpop.f32.mrf.mxu1  ;;  %1491 = vmatpush3.bf16.msra.mxu0 %v1633_v63 }
 0x209   :  { %v598_v5 = vadd.f32 %v1434_v3, %v1319_v1  ;;  %v1636_v3 = vld [vmem:[#allocation10 + $0x48] sm:$0xff]  }
 0x20a   :  { %v1436_v6 = vpop.f32.mrf.mxu1 }
 0x20b   :  { %1656 = vtanh.f32 %v598_v5  ;;  %v1437_v9 = vadd.f32 %v1436_v6, %v1435_v4  ;;  %v1637_v4 = vld [vmem:[#allocation10 + $0x8] sm:$0xff]   ;;  %v1638_v5 = vld [vmem:[#allocation10 + $0x40] sm:$0xff]  }
 0x20c   :  { %v1438_v11 = vpop.f32.mrf.mxu1  ;;  %v1639_v6 = vld [vmem:[#allocation10] sm:$0xff]  }
 0x20d   :  { %v601_v12 = vadd.f32 %v1437_v9, %v1319_v1 }
 0x20e   :  { %v1439_v15 = vpop.f32.mrf.mxu1 }
 0x20f   :  { %1658 = vtanh.f32 %v601_v12  ;;  %v1440_v17 = vadd.f32 %v1439_v15, %v1438_v11  ;;  %v1345_v11 = vld [vmem:[%s2095_s8] ss:$0 sm:$0xff] }
 0x210   :  { %v1441_v18 = vpop.f32.mrf.mxu1 }
 0x211   :  { %v606_v19 = vadd.f32 %v1440_v17, %v1319_v1 }
 0x212   :  { %v1442_v20 = vpop.f32.mrf.mxu1 }
 0x213   :  { %v1443_v22 = vadd.f32 %v1442_v20, %v1441_v18  ;;  %1660 = vtanh.f32 %v606_v19 }
 0x215   :  { %v609_v24 = vadd.f32 %v1443_v22, %v1319_v1  ;;  %v1634_v1 = vld [vmem:[#allocation10 + $0x50] sm:$0xff]  }
 0x216   :  { %1492 = vmatprep.subr.bf16.mxu0 %v1634_v1 }
 0x217   :  { %1662 = vtanh.f32 %v609_v24  ;;  %1493 = vmatpush3.bf16.msra.mxu0 %v1635_v2 }
 0x218   :  { %v1657_v27 = vpop.eup %1656  ;;  %1494 = vmatprep.subr.bf16.mxu0 %v1636_v3 }
 0x219   :  { %v736_v31 = vadd.f32 %v1657_v27, %v722_v25 }
 0x21b   :  { %1664 = vtanh.f32 %v736_v31  ;;  %1495 = vmatpush3.bf16.msra.mxu0 %v1637_v4 }
 0x21c   :  { %v1659_v32 = vpop.eup %1658  ;;  %1496 = vmatprep.subr.bf16.mxu0 %v1638_v5 }
 0x21d   :  { %v737_v33 = vadd.f32 %v1659_v32, %v725_v28 }
 0x21f   :  { %1666 = vtanh.f32 %v737_v33  ;;  %1497 = vmatpush3.bf16.msra.mxu0 %v1639_v6 }
 0x220   :  { %v1661_v35 = vpop.eup %1660 }
 0x221   :  { %v738_v38 = vadd.f32 %v1661_v35, %v730_v34 }
 0x224   :  { %v1663_v37 = vpop.eup %1662 }
 0x225   :  { %v739_v39 = vadd.f32 %v1663_v37, %v733_v36 }
 0x227   :  { %1668 = vtanh.f32 %v739_v39 }
 0x228   :  { %1670 = vtanh.f32 %v738_v38  ;;  %v1991_v40 = vpop.eup %1664 }
 0x229   :  { %v744_v45 = vrot.slane %v1991_v40, 6 }
 0x22c   :  { %v1993_v41 = vpop.eup %1666 }
 0x22d   :  { %v759_v42 = vpack.c.bf16 %v1993_v41, %v1991_v40  ;;  %v745_v46 = vrot.slane %v1993_v41, 6 }
 0x22f   :  { %928 = vmatprep.mubr.bf16.mxu1 %v759_v42  ;;  %v751_v29 = vsel %vm748_vm5, %v744_v45, %v745_v46 }
 0x234   :  { %v1999_v43 = vpop.eup %1668 }
 0x235   :  { %v747_v47 = vrot.slane %v1999_v43, 6  ;;  %v2007_v48 = vpop.eup %1670 }
 0x236   :  { %v746_v50 = vrot.slane %v2007_v48, 6  ;;  %v760_v52 = vpack.c.bf16 %v1999_v43, %v2007_v48 }
 0x237   :  { %v752_v49 = vsel %vm748_vm5, %v747_v47, %v744_v45 }
 0x238   :  { %v753_v13 = vmul.f32 %v2002_v44, %v752_v49  ;;  %v750_v54 = vsel %vm748_vm5, %v745_v46, %v746_v50  ;;  %v749_v55 = vsel %vm748_vm5, %v746_v50, %v747_v47 }
 0x239   :  { %v755_v56 = vmul.f32 %v2021_v53, %v750_v54  ;;  %v1645_v54 = vld [vmem:[%s2098_s11 + $0x10] sm:$0xff]  }
 0x23a   :  { %v757_v51 = vpack.c.bf16 %v751_v29, %v753_v13 }
 0x23b   :  { %v758_v30 = vpack.c.bf16 %v749_v55, %v755_v56  ;;  %v1646_v55 = vld [vmem:[%s2098_s11 + $0x8] sm:$0xff]   ;;  %v1647_v56 = vld [vmem:[%s2098_s11] sm:$0xff]  }
 0x23c   :  { %929 = vmatmul.mubr.bf16.vlgmr.msra.gmra.mxu1 %v757_v51  ;;  %v1641_v51 = vld [vmem:[%s2098_s11 + $0x30] sm:$0xff]  }
 0x23d   :  { %936 = vmatprep.mubr.bf16.mxu1 %v760_v52  ;;  %v1643_v52 = vld [vmem:[%s2098_s11 + $0x20] sm:$0xff]  }
 0x244   :  { %937 = vmatmul.mubr.bf16.gmra.mxu1 %v758_v30 }
 0x2fc   :  { %v1470_v7 = vpop.f32.mrf.mxu1 }
 0x2fe   :  { %v1471_v9 = vpop.f32.mrf.mxu1 }
 0x2ff   :  { %v1472_v12 = vadd.f32 %v1471_v9, %v1470_v7 }
 0x300   :  { %v1473_v15 = vpop.f32.mrf.mxu1 }
 0x301   :  { %v931_v16 = vadd.f32 %v1472_v12, %v1345_v11 }
 0x302   :  { %v1474_v17 = vpop.f32.mrf.mxu1 }
 0x303   :  { %v1475_v18 = vadd.f32 %v1474_v17, %v1473_v15  ;;  %1672 = vtanh.f32 %v931_v16 }
 0x304   :  { %v1476_v19 = vpop.f32.mrf.mxu1 }
 0x305   :  { %v934_v20 = vadd.f32 %v1475_v18, %v1345_v11 }
 0x306   :  { %v1477_v21 = vpop.f32.mrf.mxu1 }
 0x307   :  { %1674 = vtanh.f32 %v934_v20  ;;  %v1478_v23 = vadd.f32 %v1477_v21, %v1476_v19 }
 0x308   :  { %v1479_v22 = vpop.f32.mrf.mxu1 }
 0x309   :  { %v939_v26 = vadd.f32 %v1478_v23, %v1345_v11 }
 0x30a   :  { %v1480_v24 = vpop.f32.mrf.mxu1 }
 0x30b   :  { %v1481_v25 = vadd.f32 %v1480_v24, %v1479_v22 }
 0x30d   :  { %v942_v27 = vadd.f32 %v1481_v25, %v1345_v11 }
 0x30f   :  { %1676 = vtanh.f32 %v942_v27 }
 0x310   :  { %1678 = vtanh.f32 %v939_v26  ;;  %v1673_v28 = vpop.eup %1672 }
 0x311   :  { %v949_v34 = vrot.slane %v1673_v28, 6 }
 0x314   :  { %v1675_v31 = vpop.eup %1674 }
 0x315   :  { %v963_v32 = vpack.c.bf16 %v1675_v31, %v1673_v28  ;;  %v950_v35 = vrot.slane %v1675_v31, 6 }
 0x317   :  { %1132 = vmatprep.mubr.bf16.mxu0 %v963_v32  ;;  %v955_v42 = vsel %vm748_vm5, %v949_v34, %v950_v35 }
 0x31c   :  { %v1677_v33 = vpop.eup %1676 }
 0x31d   :  { %v952_v36 = vrot.slane %v1677_v33, 6  ;;  %v1679_v37 = vpop.eup %1678 }
 0x31e   :  { %v951_v45 = vrot.slane %v1679_v37, 6  ;;  %v964_v47 = vpack.c.bf16 %v1677_v33, %v1679_v37 }
 0x31f   :  { %v956_v38 = vsel %vm748_vm5, %v952_v36, %v949_v34 }
 0x320   :  { %v957_v39 = vmul.f32 %v2002_v44, %v956_v38  ;;  %v954_v49 = vsel %vm748_vm5, %v950_v35, %v951_v45  ;;  %v953_v13 = vsel %vm748_vm5, %v951_v45, %v952_v36  ;;  %v1640_v44 = vld [vmem:[%s2098_s11 + $0x38] sm:$0xff]  }
 0x321   :  { %v959_v29 = vmul.f32 %v2021_v53, %v954_v49  ;;  %1540 = vmatprep.subr.bf16.mxu1 %v1640_v44  ;;  %v1644_v53 = vld [vmem:[%s2098_s11 + $0x18] sm:$0xff]  }
 0x322   :  { %v961_v46 = vpack.c.bf16 %v955_v42, %v957_v39  ;;  %1541 = vmatpush3.bf16.msra.mxu1 %v1640_v44 }
 0x323   :  { %v962_v50 = vpack.c.bf16 %v953_v13, %v959_v29  ;;  %1542 = vmatprep.subr.bf16.mxu1 %v1641_v51 }
 0x324   :  { %1133 = vmatmul.mubr.bf16.vlgmr.msra.gmra.mxu0 %v961_v46 }
 0x325   :  { %1140 = vmatprep.mubr.bf16.mxu0 %v964_v47 }
 0x326   :  { %1543 = vmatpush3.bf16.msra.mxu1 %v1641_v51 }
 0x327   :  { %1544 = vmatprep.subr.bf16.mxu1 %v1642_v8 }
 0x32a   :  { %1545 = vmatpush3.bf16.msra.mxu1 %v1642_v8 }
 0x32b   :  { %1546 = vmatprep.subr.bf16.mxu1 %v1643_v52 }
 0x32c   :  { %1141 = vmatmul.mubr.bf16.gmra.mxu0 %v962_v50 }
 0x32e   :  { %1547 = vmatpush3.bf16.msra.mxu1 %v1643_v52 }
 0x32f   :  { %1548 = vmatprep.subr.bf16.mxu1 %v1644_v53 }
 0x332   :  { %1549 = vmatpush3.bf16.msra.mxu1 %v1644_v53 }
 0x333   :  { %1550 = vmatprep.subr.bf16.mxu1 %v1645_v54 }
 0x336   :  { %1551 = vmatpush3.bf16.msra.mxu1 %v1645_v54 }
 0x337   :  { %1552 = vmatprep.subr.bf16.mxu1 %v1646_v55 }
 0x33a   :  { %1553 = vmatpush3.bf16.msra.mxu1 %v1646_v55 }
 0x33b   :  { %1554 = vmatprep.subr.bf16.mxu1 %v1647_v56 }
 0x33e   :  { %1555 = vmatpush3.bf16.msra.mxu1 %v1647_v56 }
 0x3e4   :  { %v1498_v30 = vpop.f32.mrf.mxu0 }
 0x3e6   :  { %v1499_v14 = vpop.f32.mrf.mxu0 }
 0x3e7   :  { %v1500_v57 = vadd.f32 %v1499_v14, %v1498_v30 }
 0x3e8   :  { %v1501_v58 = vpop.f32.mrf.mxu0 }
 0x3e9   :  { %v1135_v0 = vadd.f32 %v1500_v57, %v1362_v10 }
 0x3ea   :  { %v1502_v59 = vpop.f32.mrf.mxu0 }
 0x3eb   :  { %1680 = vtanh.f32 %v1135_v0  ;;  %v1503_v60 = vadd.f32 %v1502_v59, %v1501_v58 }
 0x3ec   :  { %v1504_v61 = vpop.f32.mrf.mxu0 }
 0x3ed   :  { %v1138_v62 = vadd.f32 %v1503_v60, %v1362_v10 }
 0x3ee   :  { %v1505_v63 = vpop.f32.mrf.mxu0 }
 0x3ef   :  { %1682 = vtanh.f32 %v1138_v62  ;;  %v1506_v1 = vadd.f32 %v1505_v63, %v1504_v61 }
 0x3f0   :  { %v1507_v2 = vpop.f32.mrf.mxu0 }
 0x3f1   :  { %v1143_v3 = vadd.f32 %v1506_v1, %v1362_v10 }
 0x3f2   :  { %v1508_v4 = vpop.f32.mrf.mxu0 }
 0x3f3   :  { %1684 = vtanh.f32 %v1143_v3  ;;  %v1509_v5 = vadd.f32 %v1508_v4, %v1507_v2 }
 0x3f5   :  { %v1146_v6 = vadd.f32 %v1509_v5, %v1362_v10 }
 0x3f7   :  { %1686 = vtanh.f32 %v1146_v6 }
 0x3f8   :  { %v1681_v7 = vpop.eup %1680 }
 0x3f9   :  { %v1153_v9 = vadd.f32 %v1681_v7, %v1991_v40 }
 0x3fb   :  { %1688 = vtanh.f32 %v1153_v9 }
 0x3fc   :  { %v1683_v11 = vpop.eup %1682 }
 0x3fd   :  { %v1154_v12 = vadd.f32 %v1683_v11, %v1993_v41  ;;  %v1379_v41 = vld [vmem:[%s2099_s12] ss:$0 sm:$0xff] }
 0x3ff   :  { %1690 = vtanh.f32 %v1154_v12 }
 0x400   :  { %v1685_v15 = vpop.eup %1684 }
 0x401   :  { %v1155_v16 = vadd.f32 %v1685_v15, %v2007_v48 }
 0x403   :  { %1692 = vtanh.f32 %v1155_v16 }
 0x404   :  { %v1687_v17 = vpop.eup %1686 }
 0x405   :  { %v1156_v18 = vadd.f32 %v1687_v17, %v1999_v43 }
 0x407   :  { %1694 = vtanh.f32 %v1156_v18 }
 0x408   :  { %v1689_v19 = vpop.eup %1688 }
 0x40c   :  { %v1691_v20 = vpop.eup %1690 }
 0x40d   :  { %v1161_v21 = vpack.c.bf16 %v1691_v20, %v1689_v19 }
 0x40f   :  { %1556 = vmatprep.mubr.bf16.mxu1 %v1161_v21 }
 0x410   :  { %v1693_v22 = vpop.eup %1692 }
 0x414   :  { %v1695_v23 = vpop.eup %1694 }
 0x415   :  { %v1162_v40 = vpack.c.bf16 %v1695_v23, %v1693_v22 }
 0x417   :  { %1557 = vmatmul.mubr.bf16.vlgmr.msra.gmra.mxu1 %v1162_v40 }
 0x4d7   :  { %v1558_v24 = vpop.f32.mrf.mxu1 }
 0x4d8   :  { %v1277_v25 = vadd.f32 %v1558_v24, %v1379_v41 }
 0x4d9   :  { %v1268_v48 = vpop.f32.mrf.mxu1 }
 0x4da   :  { %1696 = vtanh.f32 %v1277_v25  ;;  %v1269_v26 = vadd.f32 %v1379_v41, %v1268_v48 }
 0x4db   :  { %v1559_v43 = vpop.f32.mrf.mxu1 }
 0x4dc   :  { %1698 = vtanh.f32 %v1269_v26  ;;  %v1280_v27 = vadd.f32 %v1559_v43, %v1379_v41 }
 0x4dd   :  { %v1271_v28 = vpop.f32.mrf.mxu1 }
 0x4de   :  { %1700 = vtanh.f32 %v1280_v27  ;;  %v1272_v31 = vadd.f32 %v1379_v41, %v1271_v28 }
 0x4e0   :  { %1702 = vtanh.f32 %v1272_v31 }
 0x4e7   :  { %v1697_v32 = vpop.eup %1696 }
 0x4e8   :  { %1289 = vst [vmem:[%s2100_s13 + $0x10] sm:$0xff] %v1697_v32 }
 0x4e9   :  { %v1699_v33 = vpop.eup %1698 }
 0x4ea   :  { %1287 = vst [vmem:[%s2100_s13] sm:$0xff] %v1699_v33 }
 0x4eb   :  { %v1701_v34 = vpop.eup %1700 }
 0x4ec   :  { %1290 = vst [vmem:[%s2100_s13 + $0x18] sm:$0xff] %v1701_v34 }
 0x4ed   :  { %v1703_v35 = vpop.eup %1702 }
 0x4ee   :  { %1288 = vst [vmem:[%s2100_s13 + $0x8] sm:$0xff] %v1703_v35 }
 0x4ef   :  { %1295 = vsyncpa [#allocation4], 1 }
 0x4f0   :  { %1296 = vsyncpa [#allocation6], 1 }
 0x4f1   :  { %1297 = vsyncpa [#allocation9], 1 }

</bundles_post_ra>
